<compile_context>
chip_gen: v7x
topology: tpu7x:2x2x1
jax: 0.10.0
libtpu: 0.0.40
codegen_flags: <defaults>
</compile_context>

<pallas_src>
import functools
import math

import numpy as np
import jax
import jax.numpy as jnp
from jax.experimental import pallas as pl
from jax.experimental.pallas import tpu as pltpu

LN_EPS = 1e-5

# Cached decision: does this jax build accept pipeline_mode=pl.Buffered(1)?
_SINGLE_BUFFER_W = {"ok": None}


def _fused_kernel(x_ref, w_ref, b_ref, g_ref, posb_ref, o_ref):
    """One (time-tile, batch) grid step.

    x_ref   : (1, tT, idim)  native dtype
    w_ref   : (idim, odim)   native dtype (pre-transposed Linear weight)
    b_ref   : (1, odim)      f32  Linear bias
    g_ref   : (1, odim)      f32  gamma * sqrt(odim)
    posb_ref: (tT, odim)     pos-encoding + beta * sqrt(odim) (out dtype when bf16, else f32)
    o_ref   : (1, tT, odim)
    """
    # MXU: native-dtype matmul, f32 accumulation.
    y = jnp.dot(x_ref[0], w_ref[...], preferred_element_type=jnp.float32)  # (tT, odim) f32
    y = y + b_ref[...]

    # LayerNorm (eps=1e-5) with a single statistics pass: both lane reductions back-to-back.
    inv_n = 1.0 / y.shape[-1]
    s1 = jnp.sum(y, axis=-1, keepdims=True)
    s2 = jnp.sum(y * y, axis=-1, keepdims=True)
    mean = s1 * inv_n
    var = s2 * inv_n - mean * mean
    inv_std = jax.lax.rsqrt(var + LN_EPS)

    # Fused affine + xscale + positional encoding (beta already folded into posb on host).
    out = (y - mean) * inv_std * g_ref[...] + posb_ref[...].astype(jnp.float32)
    o_ref[0] = out.astype(o_ref.dtype)


@functools.lru_cache(maxsize=16)
def _pos_table(max_len: int, d_model: int):
    """Standard wenet/espnet sinusoidal table, cached, f32, shape (max_len, d_model)."""
    position = np.arange(max_len, dtype=np.float32)[:, None]
    div_term = np.exp(
        np.arange(0, d_model, 2, dtype=np.float32) * (-math.log(10000.0) / d_model)
    )
    pe = np.zeros((max_len, d_model), dtype=np.float32)
    pe[:, 0::2] = np.sin(position * div_term)
    pe[:, 1::2] = np.cos(position * div_term[: d_model // 2])  # safe for odd d_model
    return jnp.asarray(pe)


def _round_up(v: int, m: int) -> int:
    return ((v + m - 1) // m) * m


def _vmem_capacity_bytes() -> int:
    """Per-core VMEM capacity; conservative (v7x-sized) fallback if the query fails."""
    try:
        return int(pltpu.get_tpu_info().vmem_capacity_bytes)
    except Exception:
        return 64 * 1024 * 1024


def _pick_row_tile(T, idim, odim, x_bytes, w_bytes, pos_bytes, out_bytes,
                   *, max_rows, vmem_budget):
    """Largest multiple-of-16 row tile (<= max_rows) whose pipelined buffers fit the budget.

    Conservatively assumes the weight block is double-buffered even when we manage to
    single-buffer it, so the choice is safe either way.
    """
    tT = min(_round_up(max(T, 1), 16), max_rows)

    def est(t):
        return (2 * t * idim * x_bytes          # x tile, double-buffered
                + 2 * idim * odim * w_bytes     # weight (worst case 2 buffers)
                + 2 * t * odim * pos_bytes      # pos+beta tile, double-buffered
                + 2 * t * odim * out_bytes      # output tile, double-buffered
                + 2 * 2 * odim * 4)             # bias / gamma (f32), double-buffered

    while tT > 16 and est(tT) > vmem_budget:
        tT -= 16
    return max(tT, 16)


def linear_no_subsampling(x, x_mask, params, *, offset: int = 0, max_tile_rows=None):
    """Forward pass of LinearNoSubsampling.

    Args:
      x:      (B, T, idim)
      x_mask: (B, 1, T) bool
      params: dict with 'w' (idim, odim) [pre-transposed], 'b', 'gamma', 'beta' (odim,)
      offset: positional-encoding offset
      max_tile_rows: optional cap on the time-tile size (testing / tuning)
    Returns:
      (x_out (B, T, odim), pos_emb (1, T, odim) f32, x_mask)
    """
    B, T, idim = x.shape
    odim = params["w"].shape[1]
    xscale = math.sqrt(odim)

    # Positional table, f32 like the torch buffer (this is what pos_enc returns).
    pos = _pos_table(offset + T, odim)[offset:offset + T]                    # (T, odim) f32

    # Fold beta * xscale into the positional table; pass it in the output dtype when bf16.
    posb = pos + (params["beta"].astype(jnp.float32) * xscale)[None, :]
    posb_dtype = x.dtype if x.dtype == jnp.bfloat16 else jnp.float32
    posb = posb.astype(posb_dtype)

    w = params["w"]                                                          # native dtype for MXU
    b = params["b"].reshape(1, odim).astype(jnp.float32)
    g = (params["gamma"].astype(jnp.float32) * xscale).reshape(1, odim)

    x_bytes = jnp.dtype(x.dtype).itemsize
    w_bytes = jnp.dtype(w.dtype).itemsize
    pos_bytes = jnp.dtype(posb_dtype).itemsize
    out_bytes = x_bytes

    cap = _vmem_capacity_bytes()
    max_rows = 1024 if cap >= (96 << 20) else 512       # big tiles on 128-MiB parts, 512 on v7x
    if max_tile_rows is not None:
        max_rows = int(max_tile_rows)
    vmem_budget = min(cap // 3, 48 << 20)               # safe on v5e's 16-MiB scoped default too
    vmem_limit = min(int(cap * 0.75), 96 << 20)         # raise the scoped limit explicitly

    tT = _pick_row_tile(T, idim, odim, x_bytes, w_bytes, pos_bytes, out_bytes,
                        max_rows=max_rows, vmem_budget=vmem_budget)

    # Grid ordered (time_tiles, B): pos/posb block index is constant over the inner batch
    # axis (no redundant pos DMA). Ragged last time tile is handled by Pallas boundary
    # padding (OOB reads padded, OOB writes dropped) -> no host-side pad/slice round trips.
    grid = (pl.cdiv(T, tT), B)

    def build(single_buffer_w: bool):
        if single_buffer_w:
            w_spec = pl.BlockSpec((idim, odim), lambda ti, bi: (0, 0),
                                  pipeline_mode=pl.Buffered(buffer_count=1))
        else:
            w_spec = pl.BlockSpec((idim, odim), lambda ti, bi: (0, 0))
        return pl.pallas_call(
            _fused_kernel,
            out_shape=jax.ShapeDtypeStruct((B, T, odim), x.dtype),
            grid_spec=pltpu.PrefetchScalarGridSpec(
                num_scalar_prefetch=0,
                grid=grid,
                in_specs=[
                    pl.BlockSpec((1, tT, idim), lambda ti, bi: (bi, ti, 0)),   # x tile
                    w_spec,                                                    # W (grid-invariant)
                    pl.BlockSpec((1, odim), lambda ti, bi: (0, 0)),            # bias (f32)
                    pl.BlockSpec((1, odim), lambda ti, bi: (0, 0)),            # gamma * xscale
                    pl.BlockSpec((tT, odim), lambda ti, bi: (ti, 0)),          # pos + beta*xscale
                ],
                out_specs=pl.BlockSpec((1, tT, odim), lambda ti, bi: (bi, ti, 0)),
            ),
            compiler_params=pltpu.CompilerParams(
                dimension_semantics=("parallel", "parallel"),
                vmem_limit_bytes=vmem_limit,
            ),
        )

    if _SINGLE_BUFFER_W["ok"] is False:
        x_out = build(False)(x, w, b, g, posb)
    else:
        try:
            x_out = build(True)(x, w, b, g, posb)
            if _SINGLE_BUFFER_W["ok"] is None:
                jax.block_until_ready(x_out)
                _SINGLE_BUFFER_W["ok"] = True
        except Exception:
            # Fallback: this jax build rejects single-buffered pipeline_mode; default 2-buffering
            # only costs one extra copy of the (grid-invariant) weight block.
            _SINGLE_BUFFER_W["ok"] = False
            x_out = build(False)(x, w, b, g, posb)

    pos_emb = pos[None, :, :]  # (1, T, odim) f32 — matches the PyTorch pos_enc output
    return x_out, pos_emb, x_mask


def _reference(x, x_mask, params, offset=0):
    """Pure-JAX reference for correctness check."""
    odim = params["w"].shape[1]
    xscale = math.sqrt(odim)
    y = x.astype(jnp.float32) @ params["w"].astype(jnp.float32) + params["b"]
    mean = y.mean(-1, keepdims=True)
    var = ((y - mean) ** 2).mean(-1, keepdims=True)
    y = (y - mean) / jnp.sqrt(var + LN_EPS)
    y = y * params["gamma"] + params["beta"]
    T = x.shape[1]
    pe = _pos_table(offset + T, odim)[offset:offset + T][None]
    return (y * xscale + pe).astype(x.dtype), pe, x_mask


if __name__ == "__main__":
    # Small but lane-dense shapes: odim a multiple of 128 so stores are unmasked.
    B, T, idim, odim = 2, 16, 64, 128

    key = jax.random.PRNGKey(0)
    kx, kw, kb, kg, kbt, kx2 = jax.random.split(key, 6)

    x = jax.random.normal(kx, (B, T, idim), dtype=jnp.float32)
    x_mask = jnp.ones((B, 1, T), dtype=jnp.bool_)

    # Non-trivial LN affine so the beta->pos fold is exercised.
    bound = 1.0 / math.sqrt(idim)
    params = {
        "w": jax.random.uniform(kw, (idim, odim), jnp.float32, -bound, bound),
        "b": jax.random.uniform(kb, (odim,), jnp.float32, -bound, bound),
        "gamma": 1.0 + 0.1 * jax.random.normal(kg, (odim,), jnp.float32),
        "beta": 0.1 * jax.random.normal(kbt, (odim,), jnp.float32),
    }

    x_out, pos_emb, mask_out = linear_no_subsampling(x, x_mask, params, offset=0)
    jax.block_until_ready(x_out)

    ref_x, ref_pe, _ = _reference(x, x_mask, params)
    assert x_out.shape == (B, T, odim) and pos_emb.shape == (1, T, odim)
    assert mask_out.shape == (B, 1, T)
    assert jnp.allclose(x_out, ref_x, atol=2e-3, rtol=2e-3), "mismatch vs reference"
    assert jnp.allclose(pos_emb, ref_pe, atol=1e-6)

    # Ragged-T path: T not a multiple of the tile; Pallas drops OOB writes, no host pad/slice.
    T2 = 20
    x2 = jax.random.normal(kx2, (B, T2, idim), dtype=jnp.float32)
    mask2 = jnp.ones((B, 1, T2), dtype=jnp.bool_)
    x_out2, pe2, _ = linear_no_subsampling(x2, mask2, params, offset=0, max_tile_rows=16)
    jax.block_until_ready(x_out2)
    ref2, ref_pe2, _ = _reference(x2, mask2, params)
    assert x_out2.shape == (B, T2, odim) and pe2.shape == (1, T2, odim)
    assert jnp.allclose(x_out2, ref2, atol=2e-3, rtol=2e-3), "ragged-T mismatch vs reference"
    assert jnp.allclose(pe2, ref_pe2, atol=1e-6)

    print("KERNEL_OK")
</pallas_src>

<mosaic_0001>
module attributes {stable_mosaic.version = 11 : i64} {
  func.func @_fused_kernel(%arg0: i32, %arg1: i32, %arg2: memref<1x16x64xf32, #tpu.memory_space<vmem>>, %arg3: memref<64x128xf32, #tpu.memory_space<vmem>>, %arg4: memref<1x128xf32, #tpu.memory_space<vmem>>, %arg5: memref<1x128xf32, #tpu.memory_space<vmem>>, %arg6: memref<16x128xf32, #tpu.memory_space<vmem>>, %arg7: memref<1x16x128xf32, #tpu.memory_space<vmem>>) attributes {dimension_semantics = [#tpu.dimension_semantics<parallel>, #tpu.dimension_semantics<parallel>], iteration_bounds = array<i64: 1, 2>, scalar_prefetch = 0 : i64, scratch_operands = 0 : i64, tpu.core_type = #tpu.core_type<tc>, window_params = [{transform_indices = @transform_0, window_bounds = array<i64: 1, 16, 64>}, {pipeline_mode = #tpu.pipeline_mode<synchronous>, transform_indices = @transform_1, window_bounds = array<i64: 64, 128>}, {pipeline_mode = #tpu.pipeline_mode<synchronous>, transform_indices = @transform_2, window_bounds = array<i64: 1, 128>}, {pipeline_mode = #tpu.pipeline_mode<synchronous>, transform_indices = @transform_3, window_bounds = array<i64: 1, 128>}, {transform_indices = @transform_4, window_bounds = array<i64: 16, 128>}, {transform_indices = @transform_5, window_bounds = array<i64: 1, 16, 128>}]} {
    %c0 = arith.constant 0 : index
    %c0_0 = arith.constant 0 : index
    %c0_1 = arith.constant 0 : index
    %0 = vector.load %arg2[%c0, %c0_0, %c0_1] : memref<1x16x64xf32, #tpu.memory_space<vmem>>, vector<1x16x64xf32>
    %1 = vector.shape_cast %0 : vector<1x16x64xf32> to vector<16x64xf32>
    %c0_2 = arith.constant 0 : index
    %c0_3 = arith.constant 0 : index
    %2 = vector.load %arg3[%c0_2, %c0_3] : memref<64x128xf32, #tpu.memory_space<vmem>>, vector<64x128xf32>
    %cst = arith.constant dense<0.000000e+00> : vector<16x128xf32>
    %3 = tpu.matmul %1, %2, %cst {dimension_numbers = #tpu.dot_dimension_numbers<[1], [0], [0], [1], [0, 0, 1, 1], [], []>} : vector<16x64xf32>, vector<64x128xf32>, vector<16x128xf32> -> vector<16x128xf32>
    %c0_4 = arith.constant 0 : index
    %c0_5 = arith.constant 0 : index
    %4 = vector.load %arg4[%c0_4, %c0_5] : memref<1x128xf32, #tpu.memory_space<vmem>>, vector<1x128xf32>
    %5 = vector.broadcast %4 : vector<1x128xf32> to vector<16x128xf32>
    %6 = arith.addf %3, %5 : vector<16x128xf32>
    %cst_6 = arith.constant dense<0.000000e+00> : vector<16xf32>
    %7 = vector.multi_reduction <add>, %6, %cst_6 [1] : vector<16x128xf32> to vector<16xf32>
    %8 = vector.shape_cast %7 : vector<16xf32> to vector<16x1xf32>
    %9 = arith.mulf %6, %6 : vector<16x128xf32>
    %cst_7 = arith.constant dense<0.000000e+00> : vector<16xf32>
    %10 = vector.multi_reduction <add>, %9, %cst_7 [1] : vector<16x128xf32> to vector<16xf32>
    %11 = vector.shape_cast %10 : vector<16xf32> to vector<16x1xf32>
    %cst_8 = arith.constant 7.812500e-03 : f32
    %12 = vector.broadcast %cst_8 : f32 to vector<16x1xf32>
    %13 = arith.mulf %8, %12 : vector<16x1xf32>
    %cst_9 = arith.constant 7.812500e-03 : f32
    %14 = vector.broadcast %cst_9 : f32 to vector<16x1xf32>
    %15 = arith.mulf %11, %14 : vector<16x1xf32>
    %16 = arith.mulf %13, %13 : vector<16x1xf32>
    %17 = arith.subf %15, %16 : vector<16x1xf32>
    %cst_10 = arith.constant 9.99999974E-6 : f32
    %18 = vector.broadcast %cst_10 : f32 to vector<16x1xf32>
    %19 = arith.addf %17, %18 : vector<16x1xf32>
    %20 = math.rsqrt %19 : vector<16x1xf32>
    %21 = vector.broadcast %13 : vector<16x1xf32> to vector<16x128xf32>
    %22 = arith.subf %6, %21 : vector<16x128xf32>
    %23 = vector.broadcast %20 : vector<16x1xf32> to vector<16x128xf32>
    %24 = arith.mulf %22, %23 : vector<16x128xf32>
    %c0_11 = arith.constant 0 : index
    %c0_12 = arith.constant 0 : index
    %25 = vector.load %arg5[%c0_11, %c0_12] : memref<1x128xf32, #tpu.memory_space<vmem>>, vector<1x128xf32>
    %26 = vector.broadcast %25 : vector<1x128xf32> to vector<16x128xf32>
    %27 = arith.mulf %24, %26 : vector<16x128xf32>
    %c0_13 = arith.constant 0 : index
    %c0_14 = arith.constant 0 : index
    %28 = vector.load %arg6[%c0_13, %c0_14] : memref<16x128xf32, #tpu.memory_space<vmem>>, vector<16x128xf32>
    %29 = arith.addf %27, %28 : vector<16x128xf32>
    %c0_15 = arith.constant 0 : index
    %c0_16 = arith.constant 0 : index
    %c0_17 = arith.constant 0 : index
    %30 = vector.load %arg7[%c0_15, %c0_16, %c0_17] : memref<1x16x128xf32, #tpu.memory_space<vmem>>, vector<1x16x128xf32>
    %31 = vector.shape_cast %30 : vector<1x16x128xf32> to vector<16x128xf32>
    %32 = vector.shape_cast %29 : vector<16x128xf32> to vector<1x16x128xf32>
    tpu.vector_store %arg7[%c0_15, %c0_16, %c0_17], %32 {strides = array<i32>} : memref<1x16x128xf32, #tpu.memory_space<vmem>>, vector<1x16x128xf32>,
    return
  }
  func.func @transform_0(%arg0: i32, %arg1: i32) -> (i32, i32, i32) {
    %c0_i32 = arith.constant 0 : i32
    %c0_i32_0 = arith.constant 0 : i32
    return %arg1, %arg0, %c0_i32 : i32, i32, i32
  }
  func.func @transform_1(%arg0: i32, %arg1: i32) -> (i32, i32) {
    %c0_i32 = arith.constant 0 : i32
    %c0_i32_0 = arith.constant 0 : i32
    %c0_i32_1 = arith.constant 0 : i32
    return %c0_i32, %c0_i32_0 : i32, i32
  }
  func.func @transform_2(%arg0: i32, %arg1: i32) -> (i32, i32) {
    %c0_i32 = arith.constant 0 : i32
    %c0_i32_0 = arith.constant 0 : i32
    %c0_i32_1 = arith.constant 0 : i32
    return %c0_i32, %c0_i32_0 : i32, i32
  }
  func.func @transform_3(%arg0: i32, %arg1: i32) -> (i32, i32) {
    %c0_i32 = arith.constant 0 : i32
    %c0_i32_0 = arith.constant 0 : i32
    %c0_i32_1 = arith.constant 0 : i32
    return %c0_i32, %c0_i32_0 : i32, i32
  }
  func.func @transform_4(%arg0: i32, %arg1: i32) -> (i32, i32) {
    %c0_i32 = arith.constant 0 : i32
    %c0_i32_0 = arith.constant 0 : i32
    return %arg0, %c0_i32 : i32, i32
  }
  func.func @transform_5(%arg0: i32, %arg1: i32) -> (i32, i32, i32) {
    %c0_i32 = arith.constant 0 : i32
    %c0_i32_0 = arith.constant 0 : i32
    return %arg1, %arg0, %c0_i32 : i32, i32, i32
  }
}

module attributes {stable_mosaic.version = 11 : i64} {
  func.func @_fused_kernel(%arg0: i32, %arg1: i32, %arg2: memref<1x16x64xf32, #tpu.memory_space<vmem>>, %arg3: memref<64x128xf32, #tpu.memory_space<vmem>>, %arg4: memref<1x128xf32, #tpu.memory_space<vmem>>, %arg5: memref<1x128xf32, #tpu.memory_space<vmem>>, %arg6: memref<16x128xf32, #tpu.memory_space<vmem>>, %arg7: memref<1x16x128xf32, #tpu.memory_space<vmem>>) attributes {dimension_semantics = [#tpu.dimension_semantics<parallel>, #tpu.dimension_semantics<parallel>], iteration_bounds = array<i64: 1, 2>, scalar_prefetch = 0 : i64, scratch_operands = 0 : i64, tpu.core_type = #tpu.core_type<tc>, window_params = [{transform_indices = @transform_0, window_bounds = array<i64: 1, 16, 64>}, {pipeline_mode = #tpu.pipeline_mode<synchronous>, transform_indices = @transform_1, window_bounds = array<i64: 64, 128>}, {pipeline_mode = #tpu.pipeline_mode<synchronous>, transform_indices = @transform_2, window_bounds = array<i64: 1, 128>}, {pipeline_mode = #tpu.pipeline_mode<synchronous>, transform_indices = @transform_3, window_bounds = array<i64: 1, 128>}, {transform_indices = @transform_4, window_bounds = array<i64: 16, 128>}, {transform_indices = @transform_5, window_bounds = array<i64: 1, 16, 128>}]} {
    %c0 = arith.constant 0 : index
    %c0_0 = arith.constant 0 : index
    %c0_1 = arith.constant 0 : index
    %0 = vector.load %arg2[%c0, %c0_0, %c0_1] : memref<1x16x64xf32, #tpu.memory_space<vmem>>, vector<1x16x64xf32>
    %1 = vector.shape_cast %0 : vector<1x16x64xf32> to vector<16x64xf32>
    %c0_2 = arith.constant 0 : index
    %c0_3 = arith.constant 0 : index
    %2 = vector.load %arg3[%c0_2, %c0_3] : memref<64x128xf32, #tpu.memory_space<vmem>>, vector<64x128xf32>
    %cst = arith.constant dense<0.000000e+00> : vector<16x128xf32>
    %3 = tpu.matmul %1, %2, %cst {dimension_numbers = #tpu.dot_dimension_numbers<[1], [0], [0], [1], [0, 0, 1, 1], [], []>} : vector<16x64xf32>, vector<64x128xf32>, vector<16x128xf32> -> vector<16x128xf32>
    %c0_4 = arith.constant 0 : index
    %c0_5 = arith.constant 0 : index
    %4 = vector.load %arg4[%c0_4, %c0_5] : memref<1x128xf32, #tpu.memory_space<vmem>>, vector<1x128xf32>
    %5 = vector.broadcast %4 : vector<1x128xf32> to vector<16x128xf32>
    %6 = arith.addf %3, %5 : vector<16x128xf32>
    %cst_6 = arith.constant dense<0.000000e+00> : vector<16xf32>
    %7 = vector.multi_reduction <add>, %6, %cst_6 [1] : vector<16x128xf32> to vector<16xf32>
    %8 = vector.shape_cast %7 : vector<16xf32> to vector<16x1xf32>
    %9 = arith.mulf %6, %6 : vector<16x128xf32>
    %cst_7 = arith.constant dense<0.000000e+00> : vector<16xf32>
    %10 = vector.multi_reduction <add>, %9, %cst_7 [1] : vector<16x128xf32> to vector<16xf32>
    %11 = vector.shape_cast %10 : vector<16xf32> to vector<16x1xf32>
    %cst_8 = arith.constant 7.812500e-03 : f32
    %12 = vector.broadcast %cst_8 : f32 to vector<16x1xf32>
    %13 = arith.mulf %8, %12 : vector<16x1xf32>
    %cst_9 = arith.constant 7.812500e-03 : f32
    %14 = vector.broadcast %cst_9 : f32 to vector<16x1xf32>
    %15 = arith.mulf %11, %14 : vector<16x1xf32>
    %16 = arith.mulf %13, %13 : vector<16x1xf32>
    %17 = arith.subf %15, %16 : vector<16x1xf32>
    %cst_10 = arith.constant 9.99999974E-6 : f32
    %18 = vector.broadcast %cst_10 : f32 to vector<16x1xf32>
    %19 = arith.addf %17, %18 : vector<16x1xf32>
    %20 = math.rsqrt %19 : vector<16x1xf32>
    %21 = vector.broadcast %13 : vector<16x1xf32> to vector<16x128xf32>
    %22 = arith.subf %6, %21 : vector<16x128xf32>
    %23 = vector.broadcast %20 : vector<16x1xf32> to vector<16x128xf32>
    %24 = arith.mulf %22, %23 : vector<16x128xf32>
    %c0_11 = arith.constant 0 : index
    %c0_12 = arith.constant 0 : index
    %25 = vector.load %arg5[%c0_11, %c0_12] : memref<1x128xf32, #tpu.memory_space<vmem>>, vector<1x128xf32>
    %26 = vector.broadcast %25 : vector<1x128xf32> to vector<16x128xf32>
    %27 = arith.mulf %24, %26 : vector<16x128xf32>
    %c0_13 = arith.constant 0 : index
    %c0_14 = arith.constant 0 : index
    %28 = vector.load %arg6[%c0_13, %c0_14] : memref<16x128xf32, #tpu.memory_space<vmem>>, vector<16x128xf32>
    %29 = arith.addf %27, %28 : vector<16x128xf32>
    %c0_15 = arith.constant 0 : index
    %c0_16 = arith.constant 0 : index
    %c0_17 = arith.constant 0 : index
    %30 = vector.load %arg7[%c0_15, %c0_16, %c0_17] : memref<1x16x128xf32, #tpu.memory_space<vmem>>, vector<1x16x128xf32>
    %31 = vector.shape_cast %30 : vector<1x16x128xf32> to vector<16x128xf32>
    %32 = vector.shape_cast %29 : vector<16x128xf32> to vector<1x16x128xf32>
    tpu.vector_store %arg7[%c0_15, %c0_16, %c0_17], %32 {strides = array<i32>} : memref<1x16x128xf32, #tpu.memory_space<vmem>>, vector<1x16x128xf32>,
    return
  }
  func.func @transform_0(%arg0: i32, %arg1: i32) -> (i32, i32, i32) {
    %c0_i32 = arith.constant 0 : i32
    %c0_i32_0 = arith.constant 0 : i32
    return %arg1, %arg0, %c0_i32 : i32, i32, i32
  }
  func.func @transform_1(%arg0: i32, %arg1: i32) -> (i32, i32) {
    %c0_i32 = arith.constant 0 : i32
    %c0_i32_0 = arith.constant 0 : i32
    %c0_i32_1 = arith.constant 0 : i32
    return %c0_i32, %c0_i32_0 : i32, i32
  }
  func.func @transform_2(%arg0: i32, %arg1: i32) -> (i32, i32) {
    %c0_i32 = arith.constant 0 : i32
    %c0_i32_0 = arith.constant 0 : i32
    %c0_i32_1 = arith.constant 0 : i32
    return %c0_i32, %c0_i32_0 : i32, i32
  }
  func.func @transform_3(%arg0: i32, %arg1: i32) -> (i32, i32) {
    %c0_i32 = arith.constant 0 : i32
    %c0_i32_0 = arith.constant 0 : i32
    %c0_i32_1 = arith.constant 0 : i32
    return %c0_i32, %c0_i32_0 : i32, i32
  }
  func.func @transform_4(%arg0: i32, %arg1: i32) -> (i32, i32) {
    %c0_i32 = arith.constant 0 : i32
    %c0_i32_0 = arith.constant 0 : i32
    return %arg0, %c0_i32 : i32, i32
  }
  func.func @transform_5(%arg0: i32, %arg1: i32) -> (i32, i32, i32) {
    %c0_i32 = arith.constant 0 : i32
    %c0_i32_0 = arith.constant 0 : i32
    return %arg1, %arg0, %c0_i32 : i32, i32, i32
  }
}

</mosaic_0001>

<bundles_post_ra>
// kernel: tpu_custom_call.1
= control target key start
LH: loop header
LB: loop body
LE: loop exit
PB: predicated region body
PF: predicated region fallthrough
CT: control target
= control target key end

     0   :  { %10 = vsyncpa [#allocation3], 0  ;;  %s1214_s0 = inlined_call_operand.hbm [shape: f32[2,16,64], index: 0, kind: input, shape index: {}]   ;;  %s1215_s1 = inlined_call_operand.hbm [shape: f32[64,128], index: 1, kind: input, shape index: {}]   ;;  %s1216_s2 = inlined_call_operand.vmem [shape: f32[1,128], index: 2, kind: input, shape index: {}]   ;;  %s1217_s3 = inlined_call_operand.vmem [shape: f32[1,128], index: 3, kind: input, shape index: {}]   ;;  %s1218_s4 = inlined_call_operand.hbm [shape: f32[16,128], index: 4, kind: input, shape index: {}]   ;;  %s1219_s5 = inlined_call_operand.hbm [shape: f32[2,16,128], index: 5, kind: output, shape index: {}]  }
   0x1   :  { %12 = vsyncpa [#allocation3 + $0x1], 0 }
   0x2   :  { %13 = vsyncpa [#allocation6], 0 }
   0x3   :  { %14 = vsyncpa [#allocation4], 0 }
   0x4   :  { %16 = vsyncpa [#allocation4 + $0x1], 0  ;;  %s938_s18 = smov 0   ;;  %s940_s19 = smov 0  }
   0x5   :  { %s942_s20 = smov 0   ;;  %s944_s21 = smov 0  }
   0x6   :  { %s946_s22 = smov 0   ;;  %s948_s23 = smov 0  }
   0x7 LB: > { %s565_s24 = sadd.s32 4294967295, %s898_s23   ;;  %s566_s25 = sadd.s32 4294967294, %s898_s23   ;;  %s898_s23 = sphi %s948_s23, %s22_s23   ;;  %s894_s22 = sphi %s946_s22, %s1243_s22   ;;  %s890_s21 = sphi %s944_s21, %s1242_s21   ;;  %s886_s20 = sphi %s942_s20, %s1241_s20   ;;  %s882_s19 = sphi %s940_s19, %s1240_s19   ;;  %s878_s18 = sphi %s938_s18, %s1239_s18  }
   0x8   : > { %p56_p0 = scmp.ne.s32.totalorder %s882_s19, %s878_s18  ;;  %p972_p1 = scmp.eq.s32.totalorder %s565_s24, 0 }
   0x9   : > { %p976_p2 = scmp.eq.s32.totalorder %s565_s24, 1  ;;  %p177_p3 = scmp.eq.s32.totalorder %s566_s25, 1 }
   0xa   : > { %s1225_s26 = scalar_select %p972_p1, 1, 0 }
   0xb   : > { %p982_p4 = por %p972_p1, %p56_p0  ;;  %p567_p5 = scmp.ge.s32.totalorder %s898_s23, 1 }
   0xc   : > { %p987_p6 = por %p177_p3, %p56_p0  ;;  %p184_p7 = scmp.lt.s32.totalorder %s898_s23, 3 }
   0xd   : > { %s1227_s28 = scalar_select %p982_p4, 1, 0 }
   0xe   : > { %s1228_s29 = scalar_select %p987_p6, 1, 0 }
   0xf   : > { %p992_p8 = pnand %p567_p5, %p184_p7  ;;  %s900_s6 = smov [#allocation5]  }
  0x10   : > { %s196_s7 = sshll.u32 %s900_s6, 4  ;;  %s901_s9 = smov [#allocation7]   ;;  %s996_s7 = int_to_ptr.vmem [resolvable:$true] %s196_s7 }
  0x11   : > { %p647_p9 = pneg %p992_p8  ;;  %s218_s10 = sshll.u32 %s901_s9, 4  ;;  %s1007_s10 = int_to_ptr.vmem [resolvable:$true] %s218_s10 }
  0x12   : > { %s726_s13 = scalar_lea.hbm %s1215_s1, 1024 }
  0x13   : > { %p1003_p11 = pnand %p647_p9, %p972_p1  ;;  %p727_p12 = scmp.ne.s32.totalorder %s1215_s1, %s726_s13 }
  0x14   : > { %p733_p5 = scmp.lt.u32.totalorder %s726_s13, %s1215_s1 }
  0x15   : > { %p728_p13 = pneg %p1003_p11 }
  0x17   : > { %p729_p0 = pnand %p728_p13, %p727_p12 }
  0x19   : > { %p730_p3 = pneg %p729_p0 }
  0x1b   : > { %p735_p7 = pnand %p733_p5, %p730_p3 }
  0x1d   : > { %738 = shalt.err (!%p735_p7)
}
  0x1e   : > { %s739_s24 = scalar_lea.vmem %s996_s7, 1024  ;;  %p747_p1 = scmp.lt.s32.totalorder %s996_s7, %s996_s7 }
  0x1f   : > { %p740_p9 = scmp.ne.s32.totalorder %s996_s7, %s739_s24  ;;  %p748_p12 = scmp.lt.s32.totalorder %s739_s24, %s739_s24 }
  0x21   : > { %p742_p10 = pnand %p740_p9, %p728_p13  ;;  %p749_p0 = por %p748_p12, %p747_p1 }
  0x23   : > { %p743_p6 = pneg %p742_p10 }
  0x25   : > { %p750_p4 = pnand %p749_p0, %p743_p6 }
  0x27   : > { %753 = shalt.err (!%p750_p4)
}
  0x28   : > { %s1223_s25 = smov 128   ;;  %s903_s6 = smov 8  }
  0x29   : > { %650 = dma.hbm_to_vmem [thread:$0]  (!%p1003_p11), %s1215_s1, 1024, %s996_s7, [#allocation6], %s1223_s25, %s1223_s25, %s903_s6  }
  0x2a   : > { %s754_s14 = scalar_lea.hbm %s1218_s4, 256 }
  0x2b   : > { %p755_p1 = scmp.ne.s32.totalorder %s1218_s4, %s754_s14  ;;  %p761_p10 = scmp.lt.u32.totalorder %s754_s14, %s1218_s4 }
  0x2d   : > { %p757_p4 = pnand %p755_p1, %p728_p13 }
  0x2f   : > { %p758_p6 = pneg %p757_p4 }
  0x31   : > { %p763_p3 = pnand %p761_p10, %p758_p6 }
  0x33   : > { %766 = shalt.err (!%p763_p3)
}
  0x34   : > { %s767_s7 = scalar_lea.vmem %s1007_s10, 256  ;;  %p775_p12 = scmp.lt.s32.totalorder %s1007_s10, %s1007_s10 }
  0x35   : > { %p768_p5 = scmp.ne.s32.totalorder %s1007_s10, %s767_s7  ;;  %p776_p0 = scmp.lt.s32.totalorder %s767_s7, %s767_s7 }
  0x37   : > { %p770_p7 = pnand %p768_p5, %p728_p13  ;;  %p777_p1 = por %p776_p0, %p775_p12 }
  0x39   : > { %p771_p9 = pneg %p770_p7 }
  0x3b   : > { %p778_p4 = pnand %p777_p1, %p771_p9 }
  0x3d   : > { %781 = shalt.err (!%p778_p4)
}
  0x3e   : > { %653 = dma.hbm_to_vmem [thread:$0]  (!%p1003_p11), %s1218_s4, 256, %s1007_s10, [#allocation6], %s1223_s25, %s1223_s25, %s903_s6  }
  0x3f   : > { %s31_s8 = sadd.s32 1, %s894_s22  ;;  %s43_s12 = sadd.s32 1, %s886_s20 }
  0x40   : > { %p32_p13 = scmp.ge.s32.totalorder %s31_s8, 2  ;;  %p50_p6 = scmp.ne.s32.totalorder %s886_s20, %s882_s19 }
  0x41   : > { %p51_p10 = scmp.eq.s32.totalorder %s898_s23, 0  ;;  %p664_p3 = scmp.lt.s32.totalorder %s898_s23, 2 }
  0x42   : > { %s1245_s8 = smov (%p32_p13, %s31_s8), 0  ;;  %p1077_p7 = por %p976_p2, %p50_p6 }
  0x43   : > { %p52_p5 = por %p51_p10, %p50_p6  ;;  %s38_s14 = ssub.s32 %s894_s22, %s1245_s8 }
  0x44   : > { %s1231_s13 = scalar_select %p1077_p7, 1, 0 }
  0x45   : > { %s232_s15 = sand.u32 1, %s886_s20   ;;  %p41_p9 = scmp.eq.s32.totalorder %s38_s14, 0 }
  0x46   : > { %s571_s10 = sshll.u32 %s232_s15, 4  ;;  %s588_s16 = sshll.u32 %s894_s22, 8 }
  0x47   : > { %s1086_s17 = scalar_select %p41_p9, %s886_s20, %s43_s12  }
  0x48   : > { %s1091_s9 = scalar_lea.hbm %s1214_s0, %s588_s16  ;;  %s236_s27 = scalar_lea.vmem [#allocation2], %s571_s10 }
  0x49   : > { %s245_s11 = sshll.u32 %s236_s27, 4  ;;  %p1095_p2 = pnand %p664_p3, %p52_p5  ;;  %s1099_s11 = int_to_ptr.vmem [resolvable:$true] %s245_s11 }
  0x4a   : > { %s1101_s12 = scalar_lea.sflag [#allocation3], %s232_s15  ;;  %s782_s14 = scalar_lea.hbm %s1091_s9, 256 }
  0x4b   : > { %p783_p11 = scmp.ne.s32.totalorder %s1091_s9, %s782_s14  ;;  %p784_p12 = pneg %p1095_p2 }
  0x4c   : > { %s787_s24 = scalar_lea.hbm %s1214_s0, 512  ;;  %p788_p4 = scmp.lt.u32.totalorder %s1091_s9, %s1214_s0 }
  0x4d   : > { %p785_p0 = pnand %p784_p12, %p783_p11  ;;  %p789_p13 = scmp.lt.u32.totalorder %s787_s24, %s782_s14 }
  0x4e   : > { %p791_p10 = scmp.lt.u32.totalorder %s782_s14, %s1091_s9 }
  0x4f   : > { %p786_p1 = pneg %p785_p0  ;;  %p790_p6 = por %p789_p13, %p788_p4 }
  0x51   : > { %p792_p3 = por %p791_p10, %p790_p6 }
  0x53   : > { %p793_p5 = pnand %p792_p3, %p786_p1 }
  0x55   : > { %796 = shalt.err (!%p793_p5)
}
  0x56   : > { %s797_s15 = scalar_lea.vmem %s1099_s11, 256  ;;  %s904_s10 = smov [#allocation2]  }
  0x57   : > { %p798_p9 = scmp.ne.s32.totalorder %s1099_s11, %s797_s15  ;;  %s802_s16 = sshll.u32 %s904_s10, 4  ;;  %s803_s16 = int_to_ptr.vmem [resolvable:$false] %s802_s16 }
  0x58   : > { %s804_s7 = scalar_lea.vmem %s803_s16, 512  ;;  %p805_p7 = scmp.lt.s32.totalorder %s1099_s11, %s803_s16 }
  0x59   : > { %p800_p11 = pnand %p798_p9, %p784_p12  ;;  %p806_p4 = scmp.lt.s32.totalorder %s804_s7, %s797_s15 }
  0x5b   : > { %p801_p0 = pneg %p800_p11  ;;  %p807_p13 = por %p806_p4, %p805_p7 }
  0x5d   : > { %p808_p6 = pnand %p807_p13, %p801_p0 }
  0x5f   : > { %811 = shalt.err (!%p808_p6)
}
  0x60   : > { %s1233_s14 = smov 128   ;;  %257 = sbr.rel (%p992_p8) target bundleno = 527 (0x20f), region = 40 }
  0x61   : > { %657 = dma.hbm_to_vmem [thread:$0]  (!%p1095_p2), %s1091_s9, 256, %s1099_s11, %s1101_s12, %s1233_s14, %s1233_s14, %s903_s6  }
  0x62   : > { %s1135_s24 = sand.u32 (!%p992_p8), 1, %s882_s19   ;;  %p1234_p7 = scmp.ne.s32.totalorder (!%p992_p8), %s1227_s28, 0 }
  0x63   : > { %s575_s27 = sshll.u32 (!%p992_p8), %s1135_s24, 4  ;;  %s260_s15 = scalar_lea.sflag (!%p992_p8), [#allocation3], %s1135_s24 }
  0x64   : > { %s263_s25 = scalar_lea.vmem (!%p992_p8), [#allocation2], %s575_s27 }
  0x67   : > { %865 = dma.done.wait (%p1234_p7), %s260_s15, 256  }
  0x68   : > { %867 = vsyncadd (%p1234_p7), %s260_s15, 4294967040  ;;  %p1235_p2 = scmp.ne.s32.totalorder %s1225_s26, 0 }
  0x6a   : > { %869 = dma.done.wait (%p1235_p2), [#allocation6], 1280  }
  0x6b   : > { %871 = vsyncadd (%p1235_p2), [#allocation6], 4294966016  ;;  %v303_v0 = vld [vmem:[#allocation5] sm:$0xff]  ;;  %v304_v1 = vld [vmem:[#allocation5 + $0x8] sm:$0xff]  ;;  %vm318_vm0 = vcmask 523264   ;;  %s589_s9 = sshll.u32 %s890_s21, 8 }
  0x6c   : > { %v305_v2 = vld [vmem:[#allocation5 + $0x10] sm:$0xff]  ;;  %v619_v3 = vpack.c.bf16 %v304_v1, %v303_v0  ;;  %v306_v4 = vld [vmem:[#allocation5 + $0x18] sm:$0xff]  ;;  %v307_v6 = vld [vmem:[#allocation5 + $0x20] sm:$0xff]  ;;  %s297_s11 = scalar_lea.vmem [#allocation8], %s575_s27  ;;  %s1163_s7 = scalar_lea.hbm %s1219_s5, %s589_s9 }
  0x6d   : > { %v623_v5 = vpack.c.bf16 %v306_v4, %v305_v2  ;;  %v308_v7 = vld [vmem:[#allocation5 + $0x28] sm:$0xff]  ;;  %v301_v8 = vld [vmem:[%s263_s25] sm:$0xff]  ;;  %v310_v11 = vld [vmem:[#allocation5 + $0x38] sm:$0xff]  ;;  %s457_s12 = sshll.u32 %s297_s11, 4  ;;  %s442_s14 = scalar_lea.sflag [#allocation4], %s1135_s24  ;;  %s1165_s12 = int_to_ptr.vmem [resolvable:$true] %s457_s12 }
  0x6e   : > { %620 = vmatprep.subr.bf16.mxu0 %v619_v3  ;;  %616 = vmatprep.mubr.msk.f32.mxu0 %vm318_vm0, %v301_v8  ;;  %v627_v9 = vpack.c.bf16 %v308_v7, %v307_v6  ;;  %v309_v10 = vld [vmem:[#allocation5 + $0x30] sm:$0xff]  ;;  %v302_v13 = vld [vmem:[%s263_s25 + $0x8] sm:$0xff]  ;;  %v579_v14 = vld [vmem:[%s1216_s2] ss:$0 sm:$0xff]  ;;  %s812_s21 = scalar_lea.vmem %s1165_s12, 256  ;;  %p1236_p12 = scmp.ne.s32.totalorder %s1231_s13, 0 }
  0x6f   : > { %622 = vmatpush3.bf16.msra.mxu0 %v619_v3  ;;  %v631_v12 = vpack.c.bf16 %v310_v11, %v309_v10  ;;  %v582_v37 = vld [vmem:[%s1217_s3] ss:$0 sm:$0xff]  ;;  %v436_v45 = vld [vmem:[#allocation7 + $0x8] sm:$0xff]  ;;  %p813_p8 = scmp.ne.s32.totalorder %s1165_s12, %s812_s21  ;;  %s905_s27 = smov [#allocation8]  }
  0x70   : > { %624 = vmatprep.subr.bf16.mxu0 %v623_v5  ;;  %v435_v39 = vld [vmem:[#allocation7] sm:$0xff]  ;;  %s816_s15 = sshll.u32 %s905_s27, 4  ;;  %s817_s15 = int_to_ptr.vmem [resolvable:$false] %s816_s15 }
  0x71   : > { %p814_p1 = pnand %p813_p8, %p1236_p12  ;;  %s818_s25 = scalar_lea.vmem %s817_s15, 512 }
  0x72   : > { %p819_p3 = scmp.lt.s32.totalorder %s1165_s12, %s817_s15  ;;  %p820_p5 = scmp.lt.s32.totalorder %s818_s25, %s812_s21 }
  0x73   : > { %626 = vmatpush3.bf16.msra.mxu0 %v623_v5  ;;  %p815_p10 = pneg %p814_p1 }
  0x74   : > { %628 = vmatprep.subr.bf16.mxu0 %v627_v9  ;;  %p821_p9 = por %p820_p5, %p819_p3 }
  0x76   : > { %p822_p11 = pnand %p821_p9, %p815_p10 }
  0x77   : > { %630 = vmatpush3.bf16.msra.mxu0 %v627_v9 }
  0x78   : > { %632 = vmatprep.subr.bf16.mxu0 %v631_v12 }
  0x7b   : > { %634 = vmatpush3.bf16.msra.mxu0 %v631_v12 }
  0x7e   : > { %617 = vmatmul.mubr.msk.f32.vlgmr.msra.gmra.mrb[0].mxu0 %vm318_vm0, %v302_v13 }
 0x151   : > { %v618_v15 = vpop.f32.mrb[0].mxu0 }
 0x152   : > { %v391_v16 = vpop.f32.mrb[1].mxu0  ;;  %v397_v18 = vadd.f32 %v618_v15, %v579_v14 }
 0x153   : > { %v392_v17 = vadd.f32 %v579_v14, %v391_v16 }
 0x154   : > { %v405_v20 = vmul.f32 %v397_v18, %v397_v18 }
 0x155   : > { %400 = vadd.xlane.f32.xlu0 %v392_v17  ;;  %v404_v19 = vmul.f32 %v392_v17, %v392_v17 }
 0x157   : > { %406 = vadd.xlane.f32.xlu1 %v404_v19 }
 0x159   : > { %402 = vadd.xlane.f32.xlu0 %v397_v18 }
 0x15b   : > { %408 = vadd.xlane.f32.xlu1 %v405_v20 }
 0x1e2   : > { %v401_v21 = vpop.xlane.xlu0 %400 }
 0x1e3   : > { %v410_v22 = vmul.f32 0.0078125, %v401_v21 }
 0x1e4   : > { %v407_v23 = vpop.xlane.xlu1 %406 }
 0x1e5   : > { %v414_v24 = vmul.f32 %v410_v22, %v410_v22  ;;  %v412_v25 = vmul.f32 0.0078125, %v407_v23  ;;  %v422_v35 = vsub.f32 %v392_v17, %v410_v22 }
 0x1e6   : > { %v403_v26 = vpop.xlane.xlu0 %402 }
 0x1e7   : > { %v416_v27 = vsub.f32 %v412_v25, %v414_v24  ;;  %v411_v28 = vmul.f32 0.0078125, %v403_v26 }
 0x1e8   : > { %v409_v29 = vpop.xlane.xlu1 %408 }
 0x1e9   : > { %v418_v30 = vadd.f32 1e-05, %v416_v27  ;;  %v415_v31 = vmul.f32 %v411_v28, %v411_v28  ;;  %v413_v32 = vmul.f32 0.0078125, %v409_v29  ;;  %v423_v41 = vsub.f32 %v397_v18, %v411_v28 }
 0x1eb   : > { %722 = vrsqrt.f32 %v418_v30  ;;  %v417_v33 = vsub.f32 %v413_v32, %v415_v31 }
 0x1ed   : > { %v419_v34 = vadd.f32 1e-05, %v417_v33 }
 0x1ef   : > { %724 = vrsqrt.f32 %v419_v34 }
 0x1f5   : > { %v723_v36 = vpop.eup %722 }
 0x1f6   : > { %v424_v38 = vmul.f32 %v723_v36, %v422_v35 }
 0x1f8   : > { %v433_v40 = vmul.f32 %v582_v37, %v424_v38 }
 0x1f9   : > { %v725_v42 = vpop.eup %724 }
 0x1fa   : > { %v437_v43 = vadd.f32 %v435_v39, %v433_v40  ;;  %v425_v44 = vmul.f32 %v725_v42, %v423_v41 }
 0x1fc   : > { %v434_v46 = vmul.f32 %v582_v37, %v425_v44  ;;  %439 = vst [vmem:[%s297_s11] sm:$0xff] %v437_v43 }
 0x1fe   : > { %v438_v47 = vadd.f32 %v436_v45, %v434_v46 }
 0x200   : > { %440 = vst [vmem:[%s297_s11 + $0x8] sm:$0xff] %v438_v47 }
 0x201   : > { %825 = shalt.err (!%p822_p11)
}
 0x202   : > { %s826_s26 = scalar_lea.hbm %s1163_s7, 256  ;;  %s830_s6 = scalar_lea.hbm %s1219_s5, 512 }
 0x203   : > { %p827_p0 = scmp.ne.s32.totalorder %s1163_s7, %s826_s26  ;;  %p831_p6 = scmp.lt.u32.totalorder %s1163_s7, %s1219_s5 }
 0x204   : > { %p832_p7 = scmp.lt.u32.totalorder %s830_s6, %s826_s26  ;;  %p834_p8 = scmp.lt.u32.totalorder %s826_s26, %s1163_s7 }
 0x205   : > { %p828_p4 = pnand %p827_p0, %p1236_p12 }
 0x206   : > { %p833_p2 = por %p832_p7, %p831_p6 }
 0x207   : > { %p829_p13 = pneg %p828_p4 }
 0x208   : > { %p835_p1 = por %p834_p8, %p833_p2 }
 0x20a   : > { %p836_p10 = pnand %p835_p1, %p829_p13 }
 0x20c   : > { %839 = shalt.err (!%p836_p10)
}
 0x20d   : > { %s906_s10 = smov 128   ;;  %s907_s16 = smov 8  }
 0x20e   : > { %645 = dma.vmem_to_hbm [thread:$0]  (%p1236_p12), %s1165_s12, 256, %s1163_s7, %s442_s14, %s906_s10, %s906_s10, %s907_s16  }
 0x20f PF: > { %s472_s21 = sand.u32 1, %s878_s18   ;;  %p1237_p3 = scmp.ne.s32.totalorder %s1228_s29, 0 }
 0x210   : > { %p1238_p5 = scmp.ge.s32.totalorder %s898_s23, 2  ;;  %s473_s27 = scalar_lea.sflag [#allocation4], %s472_s21 }
 0x212   : > { %p659_p9 = pnand %p1238_p5, %p1237_p3 }
 0x214   : > { %873 = dma.done.wait (!%p659_p9), %s473_s27, 256  }
 0x215   : > { %875 = vsyncadd (!%p659_p9), %s473_s27, 4294967040  ;;  %s22_s23 = sadd.s32 1, %s898_s23   ;;  %s1239_s18 = smov %s882_s19 }
 0x216   : > { %p19_p11 = scmp.ge.s32.totalorder %s22_s23, 4   ;;  %s1240_s19 = smov %s886_s20 }
 0x217   : > { %s1241_s20 = smov %s1086_s17  ;;  %s1242_s21 = smov %s894_s22 }
 0x218   : > { %s1243_s22 = smov %s1245_s8  ;;  %21 = sbr.rel (!%p19_p11) target bundleno = 7 (0x7), region = 94 }
 0x21f   :  { %478 = vsyncpa [#allocation3], 1 }
 0x220   :  { %480 = vsyncpa [#allocation3 + $0x1], 1 }
 0x221   :  { %481 = vsyncpa [#allocation6], 1 }
 0x222   :  { %482 = vsyncpa [#allocation4], 1 }
 0x223   :  { %484 = vsyncpa [#allocation4 + $0x1], 1 }

// kernel: tpu_custom_call.1
= control target key start
LH: loop header
LB: loop body
LE: loop exit
PB: predicated region body
PF: predicated region fallthrough
CT: control target
= control target key end

     0   :  { %10 = vsyncpa [#allocation3], 0  ;;  %s1214_s0 = inlined_call_operand.hbm [shape: f32[2,16,64], index: 0, kind: input, shape index: {}]   ;;  %s1215_s1 = inlined_call_operand.hbm [shape: f32[64,128], index: 1, kind: input, shape index: {}]   ;;  %s1216_s2 = inlined_call_operand.vmem [shape: f32[1,128], index: 2, kind: input, shape index: {}]   ;;  %s1217_s3 = inlined_call_operand.vmem [shape: f32[1,128], index: 3, kind: input, shape index: {}]   ;;  %s1218_s4 = inlined_call_operand.hbm [shape: f32[16,128], index: 4, kind: input, shape index: {}]   ;;  %s1219_s5 = inlined_call_operand.hbm [shape: f32[2,16,128], index: 5, kind: output, shape index: {}]  }
   0x1   :  { %12 = vsyncpa [#allocation3 + $0x1], 0 }
   0x2   :  { %13 = vsyncpa [#allocation6], 0 }
   0x3   :  { %14 = vsyncpa [#allocation4], 0 }
   0x4   :  { %16 = vsyncpa [#allocation4 + $0x1], 0  ;;  %s938_s18 = smov 0   ;;  %s940_s19 = smov 0  }
   0x5   :  { %s942_s20 = smov 0   ;;  %s944_s21 = smov 0  }
   0x6   :  { %s946_s22 = smov 0   ;;  %s948_s23 = smov 0  }
   0x7 LB: > { %s565_s24 = sadd.s32 4294967295, %s898_s23   ;;  %s566_s25 = sadd.s32 4294967294, %s898_s23   ;;  %s898_s23 = sphi %s948_s23, %s22_s23   ;;  %s894_s22 = sphi %s946_s22, %s1243_s22   ;;  %s890_s21 = sphi %s944_s21, %s1242_s21   ;;  %s886_s20 = sphi %s942_s20, %s1241_s20   ;;  %s882_s19 = sphi %s940_s19, %s1240_s19   ;;  %s878_s18 = sphi %s938_s18, %s1239_s18  }
   0x8   : > { %p56_p0 = scmp.ne.s32.totalorder %s882_s19, %s878_s18  ;;  %p972_p1 = scmp.eq.s32.totalorder %s565_s24, 0 }
   0x9   : > { %p976_p2 = scmp.eq.s32.totalorder %s565_s24, 1  ;;  %p177_p3 = scmp.eq.s32.totalorder %s566_s25, 1 }
   0xa   : > { %s1225_s26 = scalar_select %p972_p1, 1, 0 }
   0xb   : > { %p982_p4 = por %p972_p1, %p56_p0  ;;  %p567_p5 = scmp.ge.s32.totalorder %s898_s23, 1 }
   0xc   : > { %p987_p6 = por %p177_p3, %p56_p0  ;;  %p184_p7 = scmp.lt.s32.totalorder %s898_s23, 3 }
   0xd   : > { %s1227_s28 = scalar_select %p982_p4, 1, 0 }
   0xe   : > { %s1228_s29 = scalar_select %p987_p6, 1, 0 }
   0xf   : > { %p992_p8 = pnand %p567_p5, %p184_p7  ;;  %s900_s6 = smov [#allocation5]  }
  0x10   : > { %s196_s7 = sshll.u32 %s900_s6, 4  ;;  %s901_s9 = smov [#allocation7]   ;;  %s996_s7 = int_to_ptr.vmem [resolvable:$true] %s196_s7 }
  0x11   : > { %p647_p9 = pneg %p992_p8  ;;  %s218_s10 = sshll.u32 %s901_s9, 4  ;;  %s1007_s10 = int_to_ptr.vmem [resolvable:$true] %s218_s10 }
  0x12   : > { %s726_s13 = scalar_lea.hbm %s1215_s1, 1024 }
  0x13   : > { %p1003_p11 = pnand %p647_p9, %p972_p1  ;;  %p727_p12 = scmp.ne.s32.totalorder %s1215_s1, %s726_s13 }
  0x14   : > { %p733_p5 = scmp.lt.u32.totalorder %s726_s13, %s1215_s1 }
  0x15   : > { %p728_p13 = pneg %p1003_p11 }
  0x17   : > { %p729_p0 = pnand %p728_p13, %p727_p12 }
  0x19   : > { %p730_p3 = pneg %p729_p0 }
  0x1b   : > { %p735_p7 = pnand %p733_p5, %p730_p3 }
  0x1d   : > { %738 = shalt.err (!%p735_p7)
}
  0x1e   : > { %s739_s24 = scalar_lea.vmem %s996_s7, 1024  ;;  %p747_p1 = scmp.lt.s32.totalorder %s996_s7, %s996_s7 }
  0x1f   : > { %p740_p9 = scmp.ne.s32.totalorder %s996_s7, %s739_s24  ;;  %p748_p12 = scmp.lt.s32.totalorder %s739_s24, %s739_s24 }
  0x21   : > { %p742_p10 = pnand %p740_p9, %p728_p13  ;;  %p749_p0 = por %p748_p12, %p747_p1 }
  0x23   : > { %p743_p6 = pneg %p742_p10 }
  0x25   : > { %p750_p4 = pnand %p749_p0, %p743_p6 }
  0x27   : > { %753 = shalt.err (!%p750_p4)
}
  0x28   : > { %s1223_s25 = smov 128   ;;  %s903_s6 = smov 8  }
  0x29   : > { %650 = dma.hbm_to_vmem [thread:$0]  (!%p1003_p11), %s1215_s1, 1024, %s996_s7, [#allocation6], %s1223_s25, %s1223_s25, %s903_s6  }
  0x2a   : > { %s754_s14 = scalar_lea.hbm %s1218_s4, 256 }
  0x2b   : > { %p755_p1 = scmp.ne.s32.totalorder %s1218_s4, %s754_s14  ;;  %p761_p10 = scmp.lt.u32.totalorder %s754_s14, %s1218_s4 }
  0x2d   : > { %p757_p4 = pnand %p755_p1, %p728_p13 }
  0x2f   : > { %p758_p6 = pneg %p757_p4 }
  0x31   : > { %p763_p3 = pnand %p761_p10, %p758_p6 }
  0x33   : > { %766 = shalt.err (!%p763_p3)
}
  0x34   : > { %s767_s7 = scalar_lea.vmem %s1007_s10, 256  ;;  %p775_p12 = scmp.lt.s32.totalorder %s1007_s10, %s1007_s10 }
  0x35   : > { %p768_p5 = scmp.ne.s32.totalorder %s1007_s10, %s767_s7  ;;  %p776_p0 = scmp.lt.s32.totalorder %s767_s7, %s767_s7 }
  0x37   : > { %p770_p7 = pnand %p768_p5, %p728_p13  ;;  %p777_p1 = por %p776_p0, %p775_p12 }
  0x39   : > { %p771_p9 = pneg %p770_p7 }
  0x3b   : > { %p778_p4 = pnand %p777_p1, %p771_p9 }
  0x3d   : > { %781 = shalt.err (!%p778_p4)
}
  0x3e   : > { %653 = dma.hbm_to_vmem [thread:$0]  (!%p1003_p11), %s1218_s4, 256, %s1007_s10, [#allocation6], %s1223_s25, %s1223_s25, %s903_s6  }
  0x3f   : > { %s31_s8 = sadd.s32 1, %s894_s22  ;;  %s43_s12 = sadd.s32 1, %s886_s20 }
  0x40   : > { %p32_p13 = scmp.ge.s32.totalorder %s31_s8, 2  ;;  %p50_p6 = scmp.ne.s32.totalorder %s886_s20, %s882_s19 }
  0x41   : > { %p51_p10 = scmp.eq.s32.totalorder %s898_s23, 0  ;;  %p664_p3 = scmp.lt.s32.totalorder %s898_s23, 2 }
  0x42   : > { %s1245_s8 = smov (%p32_p13, %s31_s8), 0  ;;  %p1077_p7 = por %p976_p2, %p50_p6 }
  0x43   : > { %p52_p5 = por %p51_p10, %p50_p6  ;;  %s38_s14 = ssub.s32 %s894_s22, %s1245_s8 }
  0x44   : > { %s1231_s13 = scalar_select %p1077_p7, 1, 0 }
  0x45   : > { %s232_s15 = sand.u32 1, %s886_s20   ;;  %p41_p9 = scmp.eq.s32.totalorder %s38_s14, 0 }
  0x46   : > { %s571_s10 = sshll.u32 %s232_s15, 4  ;;  %s588_s16 = sshll.u32 %s894_s22, 8 }
  0x47   : > { %s1086_s17 = scalar_select %p41_p9, %s886_s20, %s43_s12  }
  0x48   : > { %s1091_s9 = scalar_lea.hbm %s1214_s0, %s588_s16  ;;  %s236_s27 = scalar_lea.vmem [#allocation2], %s571_s10 }
  0x49   : > { %s245_s11 = sshll.u32 %s236_s27, 4  ;;  %p1095_p2 = pnand %p664_p3, %p52_p5  ;;  %s1099_s11 = int_to_ptr.vmem [resolvable:$true] %s245_s11 }
  0x4a   : > { %s1101_s12 = scalar_lea.sflag [#allocation3], %s232_s15  ;;  %s782_s14 = scalar_lea.hbm %s1091_s9, 256 }
  0x4b   : > { %p783_p11 = scmp.ne.s32.totalorder %s1091_s9, %s782_s14  ;;  %p784_p12 = pneg %p1095_p2 }
  0x4c   : > { %s787_s24 = scalar_lea.hbm %s1214_s0, 512  ;;  %p788_p4 = scmp.lt.u32.totalorder %s1091_s9, %s1214_s0 }
  0x4d   : > { %p785_p0 = pnand %p784_p12, %p783_p11  ;;  %p789_p13 = scmp.lt.u32.totalorder %s787_s24, %s782_s14 }
  0x4e   : > { %p791_p10 = scmp.lt.u32.totalorder %s782_s14, %s1091_s9 }
  0x4f   : > { %p786_p1 = pneg %p785_p0  ;;  %p790_p6 = por %p789_p13, %p788_p4 }
  0x51   : > { %p792_p3 = por %p791_p10, %p790_p6 }
  0x53   : > { %p793_p5 = pnand %p792_p3, %p786_p1 }
  0x55   : > { %796 = shalt.err (!%p793_p5)
}
  0x56   : > { %s797_s15 = scalar_lea.vmem %s1099_s11, 256  ;;  %s904_s10 = smov [#allocation2]  }
  0x57   : > { %p798_p9 = scmp.ne.s32.totalorder %s1099_s11, %s797_s15  ;;  %s802_s16 = sshll.u32 %s904_s10, 4  ;;  %s803_s16 = int_to_ptr.vmem [resolvable:$false] %s802_s16 }
  0x58   : > { %s804_s7 = scalar_lea.vmem %s803_s16, 512  ;;  %p805_p7 = scmp.lt.s32.totalorder %s1099_s11, %s803_s16 }
  0x59   : > { %p800_p11 = pnand %p798_p9, %p784_p12  ;;  %p806_p4 = scmp.lt.s32.totalorder %s804_s7, %s797_s15 }
  0x5b   : > { %p801_p0 = pneg %p800_p11  ;;  %p807_p13 = por %p806_p4, %p805_p7 }
  0x5d   : > { %p808_p6 = pnand %p807_p13, %p801_p0 }
  0x5f   : > { %811 = shalt.err (!%p808_p6)
}
  0x60   : > { %s1233_s14 = smov 128   ;;  %257 = sbr.rel (%p992_p8) target bundleno = 527 (0x20f), region = 40 }
  0x61   : > { %657 = dma.hbm_to_vmem [thread:$0]  (!%p1095_p2), %s1091_s9, 256, %s1099_s11, %s1101_s12, %s1233_s14, %s1233_s14, %s903_s6  }
  0x62   : > { %s1135_s24 = sand.u32 (!%p992_p8), 1, %s882_s19   ;;  %p1234_p7 = scmp.ne.s32.totalorder (!%p992_p8), %s1227_s28, 0 }
  0x63   : > { %s575_s27 = sshll.u32 (!%p992_p8), %s1135_s24, 4  ;;  %s260_s15 = scalar_lea.sflag (!%p992_p8), [#allocation3], %s1135_s24 }
  0x64   : > { %s263_s25 = scalar_lea.vmem (!%p992_p8), [#allocation2], %s575_s27 }
  0x67   : > { %865 = dma.done.wait (%p1234_p7), %s260_s15, 256  }
  0x68   : > { %867 = vsyncadd (%p1234_p7), %s260_s15, 4294967040  ;;  %p1235_p2 = scmp.ne.s32.totalorder %s1225_s26, 0 }
  0x6a   : > { %869 = dma.done.wait (%p1235_p2), [#allocation6], 1280  }
  0x6b   : > { %871 = vsyncadd (%p1235_p2), [#allocation6], 4294966016  ;;  %v303_v0 = vld [vmem:[#allocation5] sm:$0xff]  ;;  %v304_v1 = vld [vmem:[#allocation5 + $0x8] sm:$0xff]  ;;  %vm318_vm0 = vcmask 523264   ;;  %s589_s9 = sshll.u32 %s890_s21, 8 }
  0x6c   : > { %v305_v2 = vld [vmem:[#allocation5 + $0x10] sm:$0xff]  ;;  %v619_v3 = vpack.c.bf16 %v304_v1, %v303_v0  ;;  %v306_v4 = vld [vmem:[#allocation5 + $0x18] sm:$0xff]  ;;  %v307_v6 = vld [vmem:[#allocation5 + $0x20] sm:$0xff]  ;;  %s297_s11 = scalar_lea.vmem [#allocation8], %s575_s27  ;;  %s1163_s7 = scalar_lea.hbm %s1219_s5, %s589_s9 }
  0x6d   : > { %v623_v5 = vpack.c.bf16 %v306_v4, %v305_v2  ;;  %v308_v7 = vld [vmem:[#allocation5 + $0x28] sm:$0xff]  ;;  %v301_v8 = vld [vmem:[%s263_s25] sm:$0xff]  ;;  %v310_v11 = vld [vmem:[#allocation5 + $0x38] sm:$0xff]  ;;  %s457_s12 = sshll.u32 %s297_s11, 4  ;;  %s442_s14 = scalar_lea.sflag [#allocation4], %s1135_s24  ;;  %s1165_s12 = int_to_ptr.vmem [resolvable:$true] %s457_s12 }
  0x6e   : > { %620 = vmatprep.subr.bf16.mxu0 %v619_v3  ;;  %616 = vmatprep.mubr.msk.f32.mxu0 %vm318_vm0, %v301_v8  ;;  %v627_v9 = vpack.c.bf16 %v308_v7, %v307_v6  ;;  %v309_v10 = vld [vmem:[#allocation5 + $0x30] sm:$0xff]  ;;  %v302_v13 = vld [vmem:[%s263_s25 + $0x8] sm:$0xff]  ;;  %v579_v14 = vld [vmem:[%s1216_s2] ss:$0 sm:$0xff]  ;;  %s812_s21 = scalar_lea.vmem %s1165_s12, 256  ;;  %p1236_p12 = scmp.ne.s32.totalorder %s1231_s13, 0 }
  0x6f   : > { %622 = vmatpush3.bf16.msra.mxu0 %v619_v3  ;;  %v631_v12 = vpack.c.bf16 %v310_v11, %v309_v10  ;;  %v582_v37 = vld [vmem:[%s1217_s3] ss:$0 sm:$0xff]  ;;  %v436_v45 = vld [vmem:[#allocation7 + $0x8] sm:$0xff]  ;;  %p813_p8 = scmp.ne.s32.totalorder %s1165_s12, %s812_s21  ;;  %s905_s27 = smov [#allocation8]  }
  0x70   : > { %624 = vmatprep.subr.bf16.mxu0 %v623_v5  ;;  %v435_v39 = vld [vmem:[#allocation7] sm:$0xff]  ;;  %s816_s15 = sshll.u32 %s905_s27, 4  ;;  %s817_s15 = int_to_ptr.vmem [resolvable:$false] %s816_s15 }
  0x71   : > { %p814_p1 = pnand %p813_p8, %p1236_p12  ;;  %s818_s25 = scalar_lea.vmem %s817_s15, 512 }
  0x72   : > { %p819_p3 = scmp.lt.s32.totalorder %s1165_s12, %s817_s15  ;;  %p820_p5 = scmp.lt.s32.totalorder %s818_s25, %s812_s21 }
  0x73   : > { %626 = vmatpush3.bf16.msra.mxu0 %v623_v5  ;;  %p815_p10 = pneg %p814_p1 }
  0x74   : > { %628 = vmatprep.subr.bf16.mxu0 %v627_v9  ;;  %p821_p9 = por %p820_p5, %p819_p3 }
  0x76   : > { %p822_p11 = pnand %p821_p9, %p815_p10 }
  0x77   : > { %630 = vmatpush3.bf16.msra.mxu0 %v627_v9 }
  0x78   : > { %632 = vmatprep.subr.bf16.mxu0 %v631_v12 }
  0x7b   : > { %634 = vmatpush3.bf16.msra.mxu0 %v631_v12 }
  0x7e   : > { %617 = vmatmul.mubr.msk.f32.vlgmr.msra.gmra.mrb[0].mxu0 %vm318_vm0, %v302_v13 }
 0x151   : > { %v618_v15 = vpop.f32.mrb[0].mxu0 }
 0x152   : > { %v391_v16 = vpop.f32.mrb[1].mxu0  ;;  %v397_v18 = vadd.f32 %v618_v15, %v579_v14 }
 0x153   : > { %v392_v17 = vadd.f32 %v579_v14, %v391_v16 }
 0x154   : > { %v405_v20 = vmul.f32 %v397_v18, %v397_v18 }
 0x155   : > { %400 = vadd.xlane.f32.xlu0 %v392_v17  ;;  %v404_v19 = vmul.f32 %v392_v17, %v392_v17 }
 0x157   : > { %406 = vadd.xlane.f32.xlu1 %v404_v19 }
 0x159   : > { %402 = vadd.xlane.f32.xlu0 %v397_v18 }
 0x15b   : > { %408 = vadd.xlane.f32.xlu1 %v405_v20 }
 0x1e2   : > { %v401_v21 = vpop.xlane.xlu0 %400 }
 0x1e3   : > { %v410_v22 = vmul.f32 0.0078125, %v401_v21 }
 0x1e4   : > { %v407_v23 = vpop.xlane.xlu1 %406 }
 0x1e5   : > { %v414_v24 = vmul.f32 %v410_v22, %v410_v22  ;;  %v412_v25 = vmul.f32 0.0078125, %v407_v23  ;;  %v422_v35 = vsub.f32 %v392_v17, %v410_v22 }
 0x1e6   : > { %v403_v26 = vpop.xlane.xlu0 %402 }
 0x1e7   : > { %v416_v27 = vsub.f32 %v412_v25, %v414_v24  ;;  %v411_v28 = vmul.f32 0.0078125, %v403_v26 }
 0x1e8   : > { %v409_v29 = vpop.xlane.xlu1 %408 }
 0x1e9   : > { %v418_v30 = vadd.f32 1e-05, %v416_v27  ;;  %v415_v31 = vmul.f32 %v411_v28, %v411_v28  ;;  %v413_v32 = vmul.f32 0.0078125, %v409_v29  ;;  %v423_v41 = vsub.f32 %v397_v18, %v411_v28 }
 0x1eb   : > { %722 = vrsqrt.f32 %v418_v30  ;;  %v417_v33 = vsub.f32 %v413_v32, %v415_v31 }
 0x1ed   : > { %v419_v34 = vadd.f32 1e-05, %v417_v33 }
 0x1ef   : > { %724 = vrsqrt.f32 %v419_v34 }
 0x1f5   : > { %v723_v36 = vpop.eup %722 }
 0x1f6   : > { %v424_v38 = vmul.f32 %v723_v36, %v422_v35 }
 0x1f8   : > { %v433_v40 = vmul.f32 %v582_v37, %v424_v38 }
 0x1f9   : > { %v725_v42 = vpop.eup %724 }
 0x1fa   : > { %v437_v43 = vadd.f32 %v435_v39, %v433_v40  ;;  %v425_v44 = vmul.f32 %v725_v42, %v423_v41 }
 0x1fc   : > { %v434_v46 = vmul.f32 %v582_v37, %v425_v44  ;;  %439 = vst [vmem:[%s297_s11] sm:$0xff] %v437_v43 }
 0x1fe   : > { %v438_v47 = vadd.f32 %v436_v45, %v434_v46 }
 0x200   : > { %440 = vst [vmem:[%s297_s11 + $0x8] sm:$0xff] %v438_v47 }
 0x201   : > { %825 = shalt.err (!%p822_p11)
}
 0x202   : > { %s826_s26 = scalar_lea.hbm %s1163_s7, 256  ;;  %s830_s6 = scalar_lea.hbm %s1219_s5, 512 }
 0x203   : > { %p827_p0 = scmp.ne.s32.totalorder %s1163_s7, %s826_s26  ;;  %p831_p6 = scmp.lt.u32.totalorder %s1163_s7, %s1219_s5 }
 0x204   : > { %p832_p7 = scmp.lt.u32.totalorder %s830_s6, %s826_s26  ;;  %p834_p8 = scmp.lt.u32.totalorder %s826_s26, %s1163_s7 }
 0x205   : > { %p828_p4 = pnand %p827_p0, %p1236_p12 }
 0x206   : > { %p833_p2 = por %p832_p7, %p831_p6 }
 0x207   : > { %p829_p13 = pneg %p828_p4 }
 0x208   : > { %p835_p1 = por %p834_p8, %p833_p2 }
 0x20a   : > { %p836_p10 = pnand %p835_p1, %p829_p13 }
 0x20c   : > { %839 = shalt.err (!%p836_p10)
}
 0x20d   : > { %s906_s10 = smov 128   ;;  %s907_s16 = smov 8  }
 0x20e   : > { %645 = dma.vmem_to_hbm [thread:$0]  (%p1236_p12), %s1165_s12, 256, %s1163_s7, %s442_s14, %s906_s10, %s906_s10, %s907_s16  }
 0x20f PF: > { %s472_s21 = sand.u32 1, %s878_s18   ;;  %p1237_p3 = scmp.ne.s32.totalorder %s1228_s29, 0 }
 0x210   : > { %p1238_p5 = scmp.ge.s32.totalorder %s898_s23, 2  ;;  %s473_s27 = scalar_lea.sflag [#allocation4], %s472_s21 }
 0x212   : > { %p659_p9 = pnand %p1238_p5, %p1237_p3 }
 0x214   : > { %873 = dma.done.wait (!%p659_p9), %s473_s27, 256  }
 0x215   : > { %875 = vsyncadd (!%p659_p9), %s473_s27, 4294967040  ;;  %s22_s23 = sadd.s32 1, %s898_s23   ;;  %s1239_s18 = smov %s882_s19 }
 0x216   : > { %p19_p11 = scmp.ge.s32.totalorder %s22_s23, 4   ;;  %s1240_s19 = smov %s886_s20 }
 0x217   : > { %s1241_s20 = smov %s1086_s17  ;;  %s1242_s21 = smov %s894_s22 }
 0x218   : > { %s1243_s22 = smov %s1245_s8  ;;  %21 = sbr.rel (!%p19_p11) target bundleno = 7 (0x7), region = 94 }
 0x21f   :  { %478 = vsyncpa [#allocation3], 1 }
 0x220   :  { %480 = vsyncpa [#allocation3 + $0x1], 1 }
 0x221   :  { %481 = vsyncpa [#allocation6], 1 }
 0x222   :  { %482 = vsyncpa [#allocation4], 1 }
 0x223   :  { %484 = vsyncpa [#allocation4 + $0x1], 1 }

</bundles_post_ra>
